<compile_context>
chip_gen: v5e
topology: v5e:2x2
jax: 0.10.0
libtpu: 0.0.40
codegen_flags: <defaults>
</compile_context>

<pallas_src>
import functools

import jax
import jax.numpy as jnp
from jax.experimental import pallas as pl
from jax.experimental.pallas import tpu as pltpu

BN_EPS = 1e-5       # nn.SyncBatchNorm default eps
NORM_EPS = 1e-12    # F.normalize default eps

VMEM_CEILING = 48 << 20   # conservative: below v7x's 64 MiB/TC physical VMEM


def _cdiv(a, b):
    return -(-a // b)


def _round_up(a, b):
    return _cdiv(a, b) * b


def _fold_bn(params):
    """Fold eval-mode BatchNorm into conv1 (exact affine per-output-channel fold).

    Returns f32 (w1_folded (Cin,Cin), b1_folded (Cin,), w2 (Cproj,Cin), b2 (Cproj,)).
    """
    w1, b1, gamma, beta, run_mean, run_var, w2, b2 = params
    s = (gamma / jnp.sqrt(run_var + BN_EPS)).astype(jnp.float32)      # (Cin,)
    w1f = w1.astype(jnp.float32) * s[:, None]                          # scale each output channel
    b1f = (b1 - run_mean) * s + beta
    return w1f, b1f.astype(jnp.float32), w2.astype(jnp.float32), b2.astype(jnp.float32)


def _projection_head_kernel(x_ref, w1_ref, b1_ref, w2_ref, b2_ref, o_ref):
    """One channel-major slab of `bn` images x `TP` pixels.

    x_ref : (bn, Cin,   TP)   stream dtype (f32 or bf16)
    w1_ref: (Cin,  Cin)       conv1 weight with BN folded in (out, in), stream dtype
    b1_ref: (Cin,  1)         conv1 bias with BN folded in, f32
    w2_ref: (Cproj, Cin)      conv2 weight (out, in), stream dtype
    b2_ref: (Cproj, 1)        conv2 bias, f32
    o_ref : (bn, Cproj, TP)   output dtype
    """
    bn = x_ref.shape[0]
    w1 = w1_ref[...]
    b1 = b1_ref[...]
    w2 = w2_ref[...]
    b2 = b2_ref[...]

    for b in range(bn):                                  # static unroll (bn is small)
        xb = x_ref[b]                                    # (Cin, TP)

        # 1x1 conv #1 (+ folded eval-mode BN): h[c,p] = sum_k W1'[c,k] x[k,p] + b1'[c]
        h = jnp.dot(w1, xb, preferred_element_type=jnp.float32) + b1
        h = jnp.maximum(h, 0.0).astype(xb.dtype)         # ReLU, back to stream dtype

        # 1x1 conv #2
        y = jnp.dot(w2, h, preferred_element_type=jnp.float32) + b2

        # F.normalize(p=2, dim=channel): y / max(||y||, eps) == y * rsqrt(max(sum(y^2), eps^2))
        # Per-pixel (per-lane-column) reduce -> garbage in masked/ragged columns
        # can never contaminate valid outputs.
        sumsq = jnp.sum(y * y, axis=0, keepdims=True)
        y = y * jax.lax.rsqrt(jnp.maximum(sumsq, NORM_EPS * NORM_EPS))

        o_ref[b] = y.astype(o_ref.dtype)


def projection_head_forward(x_nchw, params, *, tile_p=8192, out_dtype=None):
    """ProjectionHead('convmlp') eval-mode forward.

    x_nchw : (N, Cin, H, W); streamed in its own dtype (pass bf16 for half the
             HBM read traffic -- no hidden activation convert is added here).
    Returns (N, Cproj, H, W) in `out_dtype` (default: x_nchw.dtype).
    """
    N, Cin, H, W = x_nchw.shape
    Cproj = params[6].shape[0]
    HW = H * W

    cdt = x_nchw.dtype
    out_dtype = cdt if out_dtype is None else out_dtype

    # Fold BN into conv1; cast the (tiny) weights to the stream dtype, biases stay f32.
    w1f, b1f, w2, b2 = _fold_bn(params)
    w1c = w1f.astype(cdt)
    w2c = w2.astype(cdt)
    b1c = b1f.reshape(Cin, 1)
    b2c = b2.reshape(Cproj, 1)

    # Channel-major view: NCHW -> (N, Cin, H*W) is a free reshape (no copy, no pad).
    x3 = x_nchw.reshape(N, Cin, HW)

    # ---- tile selection ---------------------------------------------------
    tgt = max(128, _round_up(int(tile_p), 128))          # target pixels per grid step
    tp = min(tgt, _round_up(HW, 128))                    # lane-dense pixel tile
    bn = max(1, min(N, tgt // tp))                       # fold images when HW is small

    isz = jnp.dtype(cdt).itemsize
    osz = jnp.dtype(out_dtype).itemsize

    def vmem_bytes(bn_, tp_):
        return (2 * bn_ * Cin * tp_ * isz                 # x tiles (double buffered)
                + 2 * bn_ * Cproj * tp_ * osz             # output tiles (double buffered)
                + 2 * (Cin * Cin + Cproj * Cin) * isz     # weights (fetched once; 2x upper bound)
                + 2 * (Cin + Cproj) * 4                   # biases
                + (Cin * tp_ * isz + 2 * Cproj * tp_ * 4) # live f32 temporaries (h, y)
                + (4 << 20))                              # headroom / compiler scratch

    # Shrink tiles until the working set fits a ceiling that every generation has.
    while vmem_bytes(bn, tp) > VMEM_CEILING and (tp > 512 or bn > 1):
        if tp > 512:
            tp = _round_up(_cdiv(tp, 2), 128)
        else:
            bn = _cdiv(bn, 2)

    # Keep >= 2 grid blocks where possible so both v7x TensorCores get work.
    if _cdiv(N, bn) * _cdiv(HW, tp) < 2:
        if bn > 1:
            bn = _cdiv(bn, 2)
        elif HW > 128:
            tp = _round_up(_cdiv(HW, 2), 128)

    grid = (_cdiv(N, bn), _cdiv(HW, tp))                  # ragged last blocks are masked
    vmem_limit = int(min(max(vmem_bytes(bn, tp), 32 << 20), VMEM_CEILING))

    bcast = lambda n, p: (0, 0)
    out3 = pl.pallas_call(
        _projection_head_kernel,
        out_shape=jax.ShapeDtypeStruct((N, Cproj, HW), out_dtype),
        grid_spec=pltpu.PrefetchScalarGridSpec(
            num_scalar_prefetch=0,
            grid=grid,
            in_specs=[
                pl.BlockSpec((bn, Cin, tp), lambda n, p: (n, 0, p)),     # x slab
                # Weights/biases are revisited blocks (same (0,0) block every step ->
                # fetched into VMEM once by the pipeline); counted 2x in the budget.
                pl.BlockSpec((Cin, Cin), bcast),                          # W1' (BN folded)
                pl.BlockSpec((Cin, 1), bcast),                            # b1' (BN folded)
                pl.BlockSpec((Cproj, Cin), bcast),                        # W2
                pl.BlockSpec((Cproj, 1), bcast),                          # b2
            ],
            out_specs=pl.BlockSpec((bn, Cproj, tp), lambda n, p: (n, 0, p)),
        ),
        compiler_params=pltpu.CompilerParams(
            dimension_semantics=("parallel", "parallel"),
            vmem_limit_bytes=vmem_limit),
    )(x3, w1c, b1c, w2c, b2c)

    return out3.reshape(N, Cproj, H, W)


def init_params(key, dim_in, proj_dim):
    """Deterministic synthetic parameters in PyTorch orientation:
    conv weights are (out_channels, in_channels); biases / BN params are (C,)."""
    ks = jax.random.split(key, 8)
    w1 = 0.1 * jax.random.normal(ks[0], (dim_in, dim_in), jnp.float32)
    b1 = 0.05 * jax.random.normal(ks[1], (dim_in,), jnp.float32)
    gamma = 1.0 + 0.1 * jax.random.normal(ks[2], (dim_in,), jnp.float32)
    beta = 0.05 * jax.random.normal(ks[3], (dim_in,), jnp.float32)
    run_mean = 0.1 * jax.random.normal(ks[4], (dim_in,), jnp.float32)
    run_var = jnp.abs(1.0 + 0.1 * jax.random.normal(ks[5], (dim_in,), jnp.float32))
    w2 = 0.1 * jax.random.normal(ks[6], (proj_dim, dim_in), jnp.float32)
    b2 = 0.05 * jax.random.normal(ks[7], (proj_dim,), jnp.float32)
    return (w1, b1, gamma, beta, run_mean, run_var, w2, b2)


def reference_forward(x_nchw, params):
    """PyTorch-faithful eval-mode reference (unfolded BN, highest matmul precision)."""
    w1, b1, gamma, beta, run_mean, run_var, w2, b2 = params
    N, Cin, H, W = x_nchw.shape
    hp = jax.lax.Precision.HIGHEST
    x = x_nchw.astype(jnp.float32).reshape(N, Cin, H * W)
    h = jnp.einsum('oi,nip->nop', w1, x, precision=hp) + b1[None, :, None]
    h = (h - run_mean[None, :, None]) / jnp.sqrt(run_var + BN_EPS)[None, :, None]
    h = h * gamma[None, :, None] + beta[None, :, None]
    h = jnp.maximum(h, 0.0)
    y = jnp.einsum('oi,nip->nop', w2, h, precision=hp) + b2[None, :, None]
    norm = jnp.sqrt(jnp.sum(y * y, axis=1, keepdims=True))
    y = y / jnp.maximum(norm, NORM_EPS)
    return y.reshape(N, w2.shape[0], H, W)


def _reference_forward_folded(x_nchw, params):
    """Same math with the identical BN-fold the kernel uses (default matmul
    precision); used for a tight numerical check of the f32 kernel path."""
    w1f, b1f, w2, b2 = _fold_bn(params)
    N, Cin, H, W = x_nchw.shape
    x = x_nchw.astype(jnp.float32).reshape(N, Cin, H * W)
    h = jnp.einsum('oi,nip->nop', w1f, x) + b1f[None, :, None]
    h = jnp.maximum(h, 0.0)
    y = jnp.einsum('oi,nip->nop', w2, h) + b2[None, :, None]
    norm = jnp.sqrt(jnp.sum(y * y, axis=1, keepdims=True))
    y = y / jnp.maximum(norm, NORM_EPS)
    return y.reshape(N, w2.shape[0], H, W)


if __name__ == "__main__":
    key = jax.random.PRNGKey(0)
    kx, kp, kx2 = jax.random.split(key, 3)

    N, DIM_IN, H, W = 2, 32, 16, 16
    PROJ_DIM = 128

    x = jax.random.normal(kx, (N, DIM_IN, H, W), jnp.float32)
    params = init_params(kp, DIM_IN, PROJ_DIM)

    ref_pt = reference_forward(x, params)            # PyTorch-faithful reference
    ref_folded = _reference_forward_folded(x, params)

    # f32 streaming path (x arrives f32, output f32).
    fwd_f32 = jax.jit(functools.partial(projection_head_forward,
                                        tile_p=8192, out_dtype=jnp.float32))
    out_f32 = jax.block_until_ready(fwd_f32(x, params))
    assert out_f32.shape == (N, PROJ_DIM, H, W), out_f32.shape
    err_tight = float(jnp.max(jnp.abs(out_f32 - ref_folded)))
    err_pt = float(jnp.max(jnp.abs(out_f32 - ref_pt)))
    assert err_tight < 1e-4, f"f32 path vs folded reference: max abs err {err_tight}"
    assert err_pt < 5e-3, f"f32 path vs PyTorch-faithful reference: max abs err {err_pt}"

    # bf16 streaming path: the CALLER supplies bf16 activations (e.g. from an
    # upstream bf16 producer), so the kernel reads half the bytes and writes a
    # bf16, L2-normalized output.  No wrapper-side activation convert is added.
    x_bf16 = x.astype(jnp.bfloat16)
    fwd_bf16 = jax.jit(functools.partial(projection_head_forward, tile_p=8192))
    out_bf16 = jax.block_until_ready(fwd_bf16(x_bf16, params))
    assert out_bf16.dtype == jnp.bfloat16
    err_bf16 = float(jnp.max(jnp.abs(out_bf16.astype(jnp.float32) - ref_pt)))
    assert err_bf16 < 5e-2, f"bf16 path max abs err {err_bf16}"

    # Ragged-shape check: H*W not a multiple of 128 exercises the masked last
    # pixel block (no wrapper pad/slice passes).
    N2, H2, W2 = 1, 9, 15
    x2 = jax.random.normal(kx2, (N2, DIM_IN, H2, W2), jnp.float32)
    ref2 = reference_forward(x2, params)
    out2 = jax.block_until_ready(fwd_f32(x2, params))
    assert out2.shape == (N2, PROJ_DIM, H2, W2), out2.shape
    err2 = float(jnp.max(jnp.abs(out2 - ref2)))
    assert err2 < 5e-3, f"ragged-shape f32 path: max abs err {err2}"

    print("KERNEL_OK")
</pallas_src>

<mosaic_0001>
module attributes {stable_mosaic.version = 11 : i64} {
  func.func @_projection_head_kernel(%arg0: i32, %arg1: i32, %arg2: memref<1x32x256xf32, #tpu.memory_space<vmem>>, %arg3: memref<32x32xf32, #tpu.memory_space<vmem>>, %arg4: memref<32x1xf32, #tpu.memory_space<vmem>>, %arg5: memref<128x32xf32, #tpu.memory_space<vmem>>, %arg6: memref<128x1xf32, #tpu.memory_space<vmem>>, %arg7: memref<1x128x256xf32, #tpu.memory_space<vmem>>) attributes {dimension_semantics = [#tpu.dimension_semantics<parallel>, #tpu.dimension_semantics<parallel>], iteration_bounds = array<i64: 2, 1>, scalar_prefetch = 0 : i64, scratch_operands = 0 : i64, tpu.core_type = #tpu.core_type<tc>, window_params = [{transform_indices = @transform_0, window_bounds = array<i64: 1, 32, 256>}, {pipeline_mode = #tpu.pipeline_mode<synchronous>, transform_indices = @transform_1, window_bounds = array<i64: 32, 32>}, {pipeline_mode = #tpu.pipeline_mode<synchronous>, transform_indices = @transform_2, window_bounds = array<i64: 32, 1>}, {pipeline_mode = #tpu.pipeline_mode<synchronous>, transform_indices = @transform_3, window_bounds = array<i64: 128, 32>}, {pipeline_mode = #tpu.pipeline_mode<synchronous>, transform_indices = @transform_4, window_bounds = array<i64: 128, 1>}, {transform_indices = @transform_5, window_bounds = array<i64: 1, 128, 256>}]} {
    %c0 = arith.constant 0 : index
    %c0_0 = arith.constant 0 : index
    %0 = vector.load %arg3[%c0, %c0_0] : memref<32x32xf32, #tpu.memory_space<vmem>>, vector<32x32xf32>
    %c0_1 = arith.constant 0 : index
    %c0_2 = arith.constant 0 : index
    %1 = vector.load %arg4[%c0_1, %c0_2] : memref<32x1xf32, #tpu.memory_space<vmem>>, vector<32x1xf32>
    %c0_3 = arith.constant 0 : index
    %c0_4 = arith.constant 0 : index
    %2 = vector.load %arg5[%c0_3, %c0_4] : memref<128x32xf32, #tpu.memory_space<vmem>>, vector<128x32xf32>
    %c0_5 = arith.constant 0 : index
    %c0_6 = arith.constant 0 : index
    %3 = vector.load %arg6[%c0_5, %c0_6] : memref<128x1xf32, #tpu.memory_space<vmem>>, vector<128x1xf32>
    %c0_7 = arith.constant 0 : index
    %c0_8 = arith.constant 0 : index
    %c0_9 = arith.constant 0 : index
    %4 = vector.load %arg2[%c0_7, %c0_8, %c0_9] : memref<1x32x256xf32, #tpu.memory_space<vmem>>, vector<1x32x256xf32>
    %5 = vector.shape_cast %4 : vector<1x32x256xf32> to vector<32x256xf32>
    %cst = arith.constant dense<0.000000e+00> : vector<32x256xf32>
    %6 = tpu.matmul %0, %5, %cst {dimension_numbers = #tpu.dot_dimension_numbers<[1], [0], [0], [1], [0, 0, 1, 1], [], []>} : vector<32x32xf32>, vector<32x256xf32>, vector<32x256xf32> -> vector<32x256xf32>
    %7 = vector.broadcast %1 : vector<32x1xf32> to vector<32x256xf32>
    %8 = arith.addf %6, %7 : vector<32x256xf32>
    %cst_10 = arith.constant 0.000000e+00 : f32
    %9 = vector.broadcast %cst_10 : f32 to vector<32x256xf32>
    %10 = arith.maximumf %8, %9 : vector<32x256xf32>
    %cst_11 = arith.constant dense<0.000000e+00> : vector<128x256xf32>
    %11 = tpu.matmul %2, %10, %cst_11 {dimension_numbers = #tpu.dot_dimension_numbers<[1], [0], [0], [1], [0, 0, 1, 1], [], []>} : vector<128x32xf32>, vector<32x256xf32>, vector<128x256xf32> -> vector<128x256xf32>
    %12 = vector.broadcast %3 : vector<128x1xf32> to vector<128x256xf32>
    %13 = arith.addf %11, %12 : vector<128x256xf32>
    %14 = arith.mulf %13, %13 : vector<128x256xf32>
    %cst_12 = arith.constant dense<0.000000e+00> : vector<256xf32>
    %15 = vector.multi_reduction <add>, %14, %cst_12 [0] : vector<128x256xf32> to vector<256xf32>
    %16 = vector.shape_cast %15 : vector<256xf32> to vector<1x256xf32>
    %cst_13 = arith.constant 1.000000e-24 : f32
    %17 = vector.broadcast %cst_13 : f32 to vector<1x256xf32>
    %18 = arith.maximumf %16, %17 : vector<1x256xf32>
    %19 = math.rsqrt %18 : vector<1x256xf32>
    %20 = vector.broadcast %19 : vector<1x256xf32> to vector<128x256xf32>
    %21 = arith.mulf %13, %20 : vector<128x256xf32>
    %c0_14 = arith.constant 0 : index
    %c0_15 = arith.constant 0 : index
    %c0_16 = arith.constant 0 : index
    %22 = vector.load %arg7[%c0_14, %c0_15, %c0_16] : memref<1x128x256xf32, #tpu.memory_space<vmem>>, vector<1x128x256xf32>
    %23 = vector.shape_cast %22 : vector<1x128x256xf32> to vector<128x256xf32>
    %24 = vector.shape_cast %21 : vector<128x256xf32> to vector<1x128x256xf32>
    tpu.vector_store %arg7[%c0_14, %c0_15, %c0_16], %24 {strides = array<i32>} : memref<1x128x256xf32, #tpu.memory_space<vmem>>, vector<1x128x256xf32>,
    return
  }
  func.func @transform_0(%arg0: i32, %arg1: i32) -> (i32, i32, i32) {
    %c0_i32 = arith.constant 0 : i32
    %c0_i32_0 = arith.constant 0 : i32
    return %arg0, %c0_i32, %arg1 : i32, i32, i32
  }
  func.func @transform_1(%arg0: i32, %arg1: i32) -> (i32, i32) {
    %c0_i32 = arith.constant 0 : i32
    %c0_i32_0 = arith.constant 0 : i32
    %c0_i32_1 = arith.constant 0 : i32
    return %c0_i32, %c0_i32_0 : i32, i32
  }
  func.func @transform_2(%arg0: i32, %arg1: i32) -> (i32, i32) {
    %c0_i32 = arith.constant 0 : i32
    %c0_i32_0 = arith.constant 0 : i32
    %c0_i32_1 = arith.constant 0 : i32
    return %c0_i32, %c0_i32_0 : i32, i32
  }
  func.func @transform_3(%arg0: i32, %arg1: i32) -> (i32, i32) {
    %c0_i32 = arith.constant 0 : i32
    %c0_i32_0 = arith.constant 0 : i32
    %c0_i32_1 = arith.constant 0 : i32
    return %c0_i32, %c0_i32_0 : i32, i32
  }
  func.func @transform_4(%arg0: i32, %arg1: i32) -> (i32, i32) {
    %c0_i32 = arith.constant 0 : i32
    %c0_i32_0 = arith.constant 0 : i32
    %c0_i32_1 = arith.constant 0 : i32
    return %c0_i32, %c0_i32_0 : i32, i32
  }
  func.func @transform_5(%arg0: i32, %arg1: i32) -> (i32, i32, i32) {
    %c0_i32 = arith.constant 0 : i32
    %c0_i32_0 = arith.constant 0 : i32
    return %arg0, %c0_i32, %arg1 : i32, i32, i32
  }
}

</mosaic_0001>

<bundles_post_ra>
// kernel: projection_head_forward.1
= control target key start
LH: loop header
LB: loop body
LE: loop exit
PB: predicated region body
PF: predicated region fallthrough
CT: control target
= control target key end

     0   :  { %s1064_s18 = smov 0   ;;  %s1066_s19 = smov 0   ;;  %s1473_s0 = inlined_call_operand.vmem [shape: f32[2,32,256], index: 0, kind: input, shape index: {}]   ;;  %s1474_s1 = inlined_call_operand.vmem [shape: f32[32,32], index: 1, kind: input, shape index: {}]   ;;  %s1475_s2 = inlined_call_operand.vmem [shape: f32[32,1], index: 2, kind: input, shape index: {}]   ;;  %s1476_s3 = inlined_call_operand.vmem [shape: f32[128,32], index: 3, kind: input, shape index: {}]   ;;  %s1477_s4 = inlined_call_operand.vmem [shape: f32[128,1], index: 4, kind: input, shape index: {}]   ;;  %s1478_s5 = inlined_call_operand.vmem [shape: f32[2,128,256], index: 5, kind: output, shape index: {}]  }
   0x1   :  { %s1068_s20 = smov 0  }
   0x2 LB: > { %s27_s21 = sadd.s32 1, %s1027_s19  ;;  %p920_p0 = scmp.ge.s32.totalorder %s1031_s20, 1  ;;  %s1031_s20 = sphi %s1068_s20, %s15_s20   ;;  %s1027_s19 = sphi %s1066_s19, %s1480_s19   ;;  %s1023_s18 = sphi %s1064_s18, %s1479_s18  }
   0x3   : > { %p29_p1 = scmp.ge.s32.totalorder %s27_s21, 2  ;;  %p208_p2 = scmp.lt.s32.totalorder %s1031_s20, 3 }
   0x5   : > { %s1482_s21 = smov (%p29_p1, %s27_s21), 0  ;;  %p209_p3 = pnand %p920_p0, %p208_p2 }
   0x6   : > { %p245_p4 = scmp.lt.s32.totalorder (!%p209_p3), %s1023_s18, 1 }
   0x7   : > { %212 = sbr.rel (%p209_p3) target bundleno = 462 (0x1ce), region = 40 }
   0xc   : > { %v271_v0 = vld [vmem:[%s1475_s2 + $0x18] sm:$0xff]  ;;  %v269_v1 = vld [vmem:[%s1475_s2 + $0x8] sm:$0xff]  ;;  %v1033_v2 = vmov 0   ;;  %s1484_s18 = smov (!%p245_p4, %s1023_s18), 1  ;;  %v270_v7 = vld [vmem:[%s1475_s2 + $0x10] sm:$0xff]  ;;  %vm332_vm0 = vcmask 261120  }
   0xd   : > { %1002 = vset.pattern.permute.xlu0 %v1033_v2  ;;  %1003 = vset.pattern.permute.xlu1 %v1033_v2  ;;  %s967_s26 = sshll.u32 %s1484_s18, 6  ;;  %v268_v8 = vld [vmem:[%s1475_s2] sm:$0xff]  ;;  %v290_v14 = vld [vmem:[%s1477_s4 + $0x10] sm:$0xff]  ;;  %v291_v15 = vld [vmem:[%s1477_s4 + $0x18] sm:$0xff]  ;;  %s968_s22 = sshll.u32 %s1484_s18, 8 }
   0xe   : > { %329 = vperm.xlu0 %1002, %v271_v0   ;;  %319 = vperm.xlu1 %1003, %v269_v1   ;;  %s252_s29 = scalar_lea.vmem %s1473_s0, %s967_s26  ;;  %v264_v13 = vld [vmem:[%s1474_s1] sm:$0xff]  ;;  %v265_v16 = vld [vmem:[%s1474_s1 + $0x8] sm:$0xff]  ;;  %v294_v18 = vld [vmem:[%s1477_s4 + $0x30] sm:$0xff]  ;;  %s1398_s25 = scalar_lea.vmem %s1478_s5, %s968_s22 }
   0xf   : > { %1004 = vset.pattern.permute.xlu2 %v1033_v2  ;;  %v310_v3 = vld [vmem:[%s252_s29 + $0x30] sm:$0xff]  ;;  %v311_v4 = vld [vmem:[%s252_s29 + $0x38] sm:$0xff]  ;;  %v308_v5 = vld [vmem:[%s252_s29 + $0x20] sm:$0xff] }
  0x10   : > { %357 = vmatpush.msra.mxu0 %v310_v3  ;;  %386 = vmatpush.msra.mxu1 %v311_v4  ;;  %v309_v6 = vld [vmem:[%s252_s29 + $0x28] sm:$0xff]  ;;  %v306_v9 = vld [vmem:[%s252_s29 + $0x10] sm:$0xff]  ;;  %v307_v10 = vld [vmem:[%s252_s29 + $0x18] sm:$0xff] }
  0x11   : > { %v304_v11 = vld [vmem:[%s252_s29] sm:$0xff]  ;;  %v305_v12 = vld [vmem:[%s252_s29 + $0x8] sm:$0xff]  ;;  %v266_v19 = vld [vmem:[%s1474_s1 + $0x10] sm:$0xff] }
  0x12   : > { %358 = vmatpush.msra.mxu0 %v308_v5  ;;  %387 = vmatpush.msra.mxu1 %v309_v6  ;;  %v293_v17 = vld [vmem:[%s1477_s4 + $0x28] sm:$0xff]  ;;  %v296_v20 = vld [vmem:[%s1477_s4 + $0x40] sm:$0xff]  ;;  %v267_v22 = vld [vmem:[%s1474_s1 + $0x18] sm:$0xff] }
  0x13   : > { %v297_v21 = vld [vmem:[%s1477_s4 + $0x48] sm:$0xff]  ;;  %v299_v23 = vld [vmem:[%s1477_s4 + $0x58] sm:$0xff]  ;;  %v300_v24 = vld [vmem:[%s1477_s4 + $0x60] sm:$0xff] }
  0x14   : > { %359 = vmatpush.msra.mxu0 %v306_v9  ;;  %388 = vmatpush.msra.mxu1 %v307_v10  ;;  %v302_v25 = vld [vmem:[%s1477_s4 + $0x70] sm:$0xff]  ;;  %v303_v26 = vld [vmem:[%s1477_s4 + $0x78] sm:$0xff]  ;;  %v272_v55 = vld [vmem:[%s1476_s3] sm:$0xff] }
  0x15   : > { %v278_v56 = vld [vmem:[%s1476_s3 + $0x30] sm:$0xff]  ;;  %v288_v57 = vld [vmem:[%s1477_s4] sm:$0xff]  ;;  %v273_v58 = vld [vmem:[%s1476_s3 + $0x8] sm:$0xff] }
  0x16   : > { %324 = vperm.xlu0 %1002, %v270_v7   ;;  %314 = vperm.xlu1 %1003, %v268_v8   ;;  %v279_v59 = vld [vmem:[%s1476_s3 + $0x38] sm:$0xff]  ;;  %v289_v60 = vld [vmem:[%s1477_s4 + $0x8] sm:$0xff]  ;;  %v274_v61 = vld [vmem:[%s1476_s3 + $0x10] sm:$0xff] }
  0x17   : > { %360 = vmatpush.msra.mxu0 %v304_v11  ;;  %389 = vmatpush.msra.mxu1 %v305_v12  ;;  %v280_v62 = vld [vmem:[%s1476_s3 + $0x40] sm:$0xff]  ;;  %v275_v0 = vld [vmem:[%s1476_s3 + $0x18] sm:$0xff]  ;;  %v281_v1 = vld [vmem:[%s1476_s3 + $0x48] sm:$0xff] }
  0x18   : > { %925 = vmatmul.msk.f32.vlgmr.msra.gmra.mxu0 %vm332_vm0, %v264_v13  ;;  %929 = vmatmul.msk.f32.vlgmr.msra.gmra.mxu1 %vm332_vm0, %v264_v13  ;;  %v292_v63 = vld [vmem:[%s1477_s4 + $0x20] sm:$0xff]  ;;  %v295_v2 = vld [vmem:[%s1477_s4 + $0x38] sm:$0xff]  ;;  %v282_v4 = vld [vmem:[%s1476_s3 + $0x50] sm:$0xff] }
  0x19   : > { %413 = vperm.xlu2 %1004, %v288_v57   ;;  %v276_v3 = vld [vmem:[%s1476_s3 + $0x20] sm:$0xff]  ;;  %v298_v5 = vld [vmem:[%s1477_s4 + $0x50] sm:$0xff]  ;;  %v277_v6 = vld [vmem:[%s1476_s3 + $0x28] sm:$0xff] }
  0x1a   : > { %v283_v7 = vld [vmem:[%s1476_s3 + $0x58] sm:$0xff]  ;;  %v301_v8 = vld [vmem:[%s1477_s4 + $0x68] sm:$0xff]  ;;  %v284_v9 = vld [vmem:[%s1476_s3 + $0x60] sm:$0xff] }
  0x1b   : > { %v285_v10 = vld [vmem:[%s1476_s3 + $0x68] sm:$0xff]  ;;  %v286_v11 = vld [vmem:[%s1476_s3 + $0x70] sm:$0xff]  ;;  %v287_v12 = vld [vmem:[%s1476_s3 + $0x78] sm:$0xff] }
  0x1e   : > { %423 = vperm.xlu0 %1002, %v290_v14   ;;  %428 = vperm.xlu1 %1003, %v291_v15  }
  0x20   : > { %926 = vmatmul.msk.f32.gmra.mxu0 %vm332_vm0, %v265_v16  ;;  %930 = vmatmul.msk.f32.gmra.mxu1 %vm332_vm0, %v265_v16 }
  0x21   : > { %418 = vperm.xlu2 %1004, %v289_v60  }
  0x26   : > { %438 = vperm.xlu0 %1002, %v293_v17   ;;  %443 = vperm.xlu1 %1003, %v294_v18  }
  0x28   : > { %927 = vmatmul.msk.f32.gmra.mxu0 %vm332_vm0, %v266_v19  ;;  %931 = vmatmul.msk.f32.gmra.mxu1 %vm332_vm0, %v266_v19 }
  0x29   : > { %433 = vperm.xlu2 %1004, %v292_v63  }
  0x2e   : > { %453 = vperm.xlu0 %1002, %v296_v20   ;;  %458 = vperm.xlu1 %1003, %v297_v21  }
  0x30   : > { %928 = vmatmul.msk.f32.gmra.mxu0 %vm332_vm0, %v267_v22  ;;  %932 = vmatmul.msk.f32.gmra.mxu1 %vm332_vm0, %v267_v22 }
  0x31   : > { %448 = vperm.xlu2 %1004, %v295_v2  }
  0x36   : > { %468 = vperm.xlu0 %1002, %v299_v23   ;;  %473 = vperm.xlu1 %1003, %v300_v24  }
  0x39   : > { %463 = vperm.xlu2 %1004, %v298_v5  }
  0x3e   : > { %483 = vperm.xlu0 %1002, %v302_v25   ;;  %488 = vperm.xlu1 %1003, %v303_v26  }
  0x41   : > { %478 = vperm.xlu2 %1004, %v301_v8  }
  0x73   : > { %v414_v23 = vpop.permute.xlu2 %413 }
  0x80   : > { %v330_v31 = vpop.permute.xlu0 %329  ;;  %v320_v34 = vpop.permute.xlu1 %319 }
  0x88   : > { %v325_v35 = vpop.permute.xlu0 %324  ;;  %v315_v45 = vpop.permute.xlu1 %314 }
  0x95   : > { %v362_v27 = vpop.f32.mrf.mxu0  ;;  %v391_v28 = vpop.f32.mrf.mxu1 }
  0x96   : > { %v363_v47 = vadd.f32 %v362_v27, %v315_v45  ;;  %v392_v49 = vadd.f32 %v391_v28, %v315_v45  ;;  %v419_v28 = vpop.permute.xlu2 %418 }
  0x98   : > { %v403_v53 = vmax.f32 %v363_v47, 0.0  ;;  %v404_v54 = vmax.f32 %v392_v49, 0.0 }
  0x9d   : > { %v365_v29 = vpop.f32.mrf.mxu0  ;;  %v394_v30 = vpop.f32.mrf.mxu1 }
  0x9e   : > { %v366_v42 = vadd.f32 %v365_v29, %v320_v34  ;;  %v395_v46 = vadd.f32 %v394_v30, %v320_v34  ;;  %v424_v29 = vpop.permute.xlu0 %423 }
  0xa0   : > { %v405_v51 = vmax.f32 %v366_v42, 0.0  ;;  %v406_v52 = vmax.f32 %v395_v46, 0.0  ;;  %v434_v46 = vpop.permute.xlu2 %433 }
  0xa5   : > { %v368_v32 = vpop.f32.mrf.mxu0  ;;  %v397_v33 = vpop.f32.mrf.mxu1 }
  0xa6   : > { %v369_v38 = vadd.f32 %v368_v32, %v325_v35  ;;  %v398_v41 = vadd.f32 %v397_v33, %v325_v35 }
  0xa8   : > { %v407_v48 = vmax.f32 %v369_v38, 0.0  ;;  %v408_v50 = vmax.f32 %v398_v41, 0.0  ;;  %v429_v41 = vpop.permute.xlu1 %428 }
  0xad   : > { %v371_v36 = vpop.f32.mrf.mxu0  ;;  %v400_v37 = vpop.f32.mrf.mxu1 }
  0xae   : > { %v372_v39 = vadd.f32 %v371_v36, %v330_v31  ;;  %v401_v40 = vadd.f32 %v400_v37, %v330_v31 }
  0xb0   : > { %v409_v43 = vmax.f32 %v372_v39, 0.0  ;;  %v410_v44 = vmax.f32 %v401_v40, 0.0  ;;  %v444_v5 = vpop.permute.xlu1 %443 }
  0xb2   : > { %551 = vmatpush.msrb.mxu0 %v409_v43  ;;  %969 = vmatpush.msra.mxu2 %v409_v43 }
  0xb3   : > { %616 = vmatpush.msrb.mxu1 %v410_v44  ;;  %973 = vmatpush.msra.mxu3 %v410_v44 }
  0xb4   : > { %552 = vmatpush.msrb.mxu0 %v407_v48  ;;  %970 = vmatpush.msra.mxu2 %v407_v48 }
  0xb5   : > { %617 = vmatpush.msrb.mxu1 %v408_v50  ;;  %974 = vmatpush.msra.mxu3 %v408_v50 }
  0xb6   : > { %553 = vmatpush.msrb.mxu0 %v405_v51  ;;  %971 = vmatpush.msra.mxu2 %v405_v51 }
  0xb7   : > { %618 = vmatpush.msrb.mxu1 %v406_v52  ;;  %975 = vmatpush.msra.mxu3 %v406_v52 }
  0xb8   : > { %554 = vmatpush.msrb.mxu0 %v403_v53  ;;  %972 = vmatpush.msra.mxu2 %v403_v53  ;;  %v439_v53 = vpop.permute.xlu0 %438 }
  0xb9   : > { %619 = vmatpush.msrb.mxu1 %v404_v54  ;;  %976 = vmatpush.msra.mxu3 %v404_v54 }
  0xba   : > { %933 = vmatmul.msk.f32.vlgmr.msrb.gmra.mxu0 %vm332_vm0, %v272_v55  ;;  %939 = vmatmul.msk.f32.vlgmr.msra.gmra.mxu2 %vm332_vm0, %v278_v56 }
  0xbb   : > { %949 = vmatmul.msk.f32.vlgmr.msrb.gmra.mxu1 %vm332_vm0, %v272_v55  ;;  %955 = vmatmul.msk.f32.vlgmr.msra.gmra.mxu3 %vm332_vm0, %v278_v56 }
  0xc2   : > { %934 = vmatmul.msk.f32.gmra.mxu0 %vm332_vm0, %v273_v58  ;;  %940 = vmatmul.msk.f32.gmra.mxu2 %vm332_vm0, %v279_v59 }
  0xc3   : > { %950 = vmatmul.msk.f32.gmra.mxu1 %vm332_vm0, %v273_v58  ;;  %956 = vmatmul.msk.f32.gmra.mxu3 %vm332_vm0, %v279_v59 }
  0xca   : > { %935 = vmatmul.msk.f32.gmra.mxu0 %vm332_vm0, %v274_v61  ;;  %941 = vmatmul.msk.f32.gmra.mxu2 %vm332_vm0, %v280_v62 }
  0xcb   : > { %951 = vmatmul.msk.f32.gmra.mxu1 %vm332_vm0, %v274_v61  ;;  %957 = vmatmul.msk.f32.gmra.mxu3 %vm332_vm0, %v280_v62 }
  0xd2   : > { %936 = vmatmul.msk.f32.gmra.mxu0 %vm332_vm0, %v275_v0  ;;  %942 = vmatmul.msk.f32.gmra.mxu2 %vm332_vm0, %v281_v1 }
  0xd3   : > { %952 = vmatmul.msk.f32.gmra.mxu1 %vm332_vm0, %v275_v0  ;;  %958 = vmatmul.msk.f32.gmra.mxu3 %vm332_vm0, %v281_v1 }
  0xda   : > { %937 = vmatmul.msk.f32.gmra.mxu0 %vm332_vm0, %v276_v3  ;;  %943 = vmatmul.msk.f32.gmra.mxu2 %vm332_vm0, %v282_v4 }
  0xdb   : > { %953 = vmatmul.msk.f32.gmra.mxu1 %vm332_vm0, %v276_v3  ;;  %959 = vmatmul.msk.f32.gmra.mxu3 %vm332_vm0, %v282_v4 }
  0xe2   : > { %938 = vmatmul.msk.f32.gmra.mxu0 %vm332_vm0, %v277_v6  ;;  %944 = vmatmul.msk.f32.gmra.mxu2 %vm332_vm0, %v283_v7 }
  0xe3   : > { %954 = vmatmul.msk.f32.gmra.mxu1 %vm332_vm0, %v277_v6  ;;  %960 = vmatmul.msk.f32.gmra.mxu3 %vm332_vm0, %v283_v7 }
  0xea   : > { %945 = vmatmul.msk.f32.gmra.mxu2 %vm332_vm0, %v284_v9 }
  0xeb   : > { %961 = vmatmul.msk.f32.gmra.mxu3 %vm332_vm0, %v284_v9 }
  0xf2   : > { %946 = vmatmul.msk.f32.gmra.mxu2 %vm332_vm0, %v285_v10 }
  0xf3   : > { %962 = vmatmul.msk.f32.gmra.mxu3 %vm332_vm0, %v285_v10 }
  0xfa   : > { %947 = vmatmul.msk.f32.gmra.mxu2 %vm332_vm0, %v286_v11 }
  0xfb   : > { %963 = vmatmul.msk.f32.gmra.mxu3 %vm332_vm0, %v286_v11 }
 0x102   : > { %948 = vmatmul.msk.f32.gmra.mxu2 %vm332_vm0, %v287_v12 }
 0x103   : > { %964 = vmatmul.msk.f32.gmra.mxu3 %vm332_vm0, %v287_v12 }
 0x137   : > { %v556_v13 = vpop.f32.mrf.mxu0 }
 0x138   : > { %v621_v14 = vpop.f32.mrf.mxu1  ;;  %v1258_v31 = vadd.f32 %v556_v13, %v414_v23  ;;  %v449_v13 = vpop.permute.xlu2 %448 }
 0x139   : > { %v1264_v34 = vadd.f32 %v621_v14, %v414_v23  ;;  %v454_v23 = vpop.permute.xlu0 %453 }
 0x13a   : > { %v669_v38 = vmul.f32 %v1258_v31, %v1258_v31 }
 0x13b   : > { %v670_v42 = vmul.f32 %v1264_v34, %v1264_v34 }
 0x13d   : > { %v574_v15 = vpop.f32.mrf.mxu2 }
 0x13e   : > { %v639_v16 = vpop.f32.mrf.mxu3  ;;  %v1308_v9 = vadd.f32 %v574_v15, %v444_v5 }
 0x13f   : > { %v559_v17 = vpop.f32.mrf.mxu0  ;;  %v1310_v12 = vadd.f32 %v639_v16, %v444_v5 }
 0x140   : > { %v624_v18 = vpop.f32.mrf.mxu1  ;;  %v1260_v32 = vadd.f32 %v559_v17, %v419_v28 }
 0x141   : > { %v1266_v35 = vadd.f32 %v624_v18, %v419_v28 }
 0x142   : > { %v671_v39 = vmul.f32 %v1260_v32, %v1260_v32 }
 0x143   : > { %v672_v43 = vmul.f32 %v1266_v35, %v1266_v35 }
 0x144   : > { %v701_v49 = vadd.f32 %v671_v39, %v669_v38 }
 0x145   : > { %v1248_v19 = vpop.f32.mrf.mxu2  ;;  %v722_v54 = vadd.f32 %v672_v43, %v670_v42 }
 0x146   : > { %v1250_v20 = vpop.f32.mrf.mxu3 }
 0x147   : > { %v562_v21 = vpop.f32.mrf.mxu0  ;;  %v1320_v15 = vadd.f32 %v1250_v20, %v449_v13 }
 0x148   : > { %v627_v22 = vpop.f32.mrf.mxu1  ;;  %v1272_v40 = vadd.f32 %v562_v21, %v424_v29  ;;  %v681_v21 = vmul.f32 %v1308_v9, %v1308_v9 }
 0x149   : > { %v1278_v44 = vadd.f32 %v627_v22, %v424_v29  ;;  %v1315_v22 = vadd.f32 %v1248_v19, %v449_v13  ;;  %v684_v19 = vmul.f32 %v1320_v15, %v1320_v15 }
 0x14a   : > { %v673_v50 = vmul.f32 %v1272_v40, %v1272_v40 }
 0x14b   : > { %v674_v55 = vmul.f32 %v1278_v44, %v1278_v44  ;;  %v683_v29 = vmul.f32 %v1315_v22, %v1315_v22 }
 0x14c   : > { %v702_v63 = vadd.f32 %v701_v49, %v673_v50  ;;  %v464_v49 = vpop.permute.xlu2 %463 }
 0x14d   : > { %v1252_v24 = vpop.f32.mrf.mxu2  ;;  %v723_v1 = vadd.f32 %v722_v54, %v674_v55 }
 0x14e   : > { %v1254_v25 = vpop.f32.mrf.mxu3 }
 0x14f   : > { %v565_v26 = vpop.f32.mrf.mxu0  ;;  %v1330_v38 = vadd.f32 %v1254_v25, %v454_v23 }
 0x150   : > { %v630_v27 = vpop.f32.mrf.mxu1  ;;  %v1280_v45 = vadd.f32 %v565_v26, %v429_v41  ;;  %v682_v26 = vmul.f32 %v1310_v12, %v1310_v12 }
 0x151   : > { %v1282_v47 = vadd.f32 %v630_v27, %v429_v41  ;;  %v459_v41 = vpop.permute.xlu1 %458 }
 0x152   : > { %v675_v58 = vmul.f32 %v1280_v45, %v1280_v45 }
 0x153   : > { %v676_v61 = vmul.f32 %v1282_v47, %v1282_v47 }
 0x154   : > { %v703_v3 = vadd.f32 %v702_v63, %v675_v58  ;;  %v479_v5 = vpop.permute.xlu2 %478 }
 0x155   : > { %v1256_v30 = vpop.f32.mrf.mxu2  ;;  %v724_v6 = vadd.f32 %v723_v1, %v676_v61 }
 0x156   : > { %v1262_v33 = vpop.f32.mrf.mxu3  ;;  %v1335_v43 = vadd.f32 %v1256_v30, %v459_v41 }
 0x157   : > { %v568_v36 = vpop.f32.mrf.mxu0 }
 0x158   : > { %v633_v37 = vpop.f32.mrf.mxu1  ;;  %v1286_v51 = vadd.f32 %v568_v36, %v434_v46  ;;  %v1325_v36 = vadd.f32 %v1252_v24, %v454_v23  ;;  %v686_v24 = vmul.f32 %v1330_v38, %v1330_v38  ;;  %v687_v55 = vmul.f32 %v1335_v43, %v1335_v43 }
 0x159   : > { %v1290_v56 = vadd.f32 %v633_v37, %v434_v46  ;;  %v1340_v46 = vadd.f32 %v1262_v33, %v459_v41  ;;  %v474_v1 = vpop.permute.xlu1 %473 }
 0x15a   : > { %v677_v0 = vmul.f32 %v1286_v51, %v1286_v51  ;;  %v685_v42 = vmul.f32 %v1325_v36, %v1325_v36 }
 0x15b   : > { %v678_v2 = vmul.f32 %v1290_v56, %v1290_v56  ;;  %v688_v30 = vmul.f32 %v1340_v46, %v1340_v46 }
 0x15c   : > { %v704_v10 = vadd.f32 %v703_v3, %v677_v0 }
 0x15d   : > { %v586_v48 = vpop.f32.mrf.mxu2  ;;  %v725_v14 = vadd.f32 %v724_v6, %v678_v2 }
 0x15e   : > { %v651_v52 = vpop.f32.mrf.mxu3 }
 0x15f   : > { %v571_v57 = vpop.f32.mrf.mxu0 }
 0x160   : > { %v1294_v59 = vadd.f32 %v571_v57, %v439_v53  ;;  %v636_v60 = vpop.f32.mrf.mxu1  ;;  %v1344_v57 = vadd.f32 %v586_v48, %v464_v49 }
 0x161   : > { %v1298_v62 = vadd.f32 %v636_v60, %v439_v53  ;;  %v469_v53 = vpop.permute.xlu0 %468  ;;  %v1348_v60 = vadd.f32 %v651_v52, %v464_v49 }
 0x162   : > { %v679_v4 = vmul.f32 %v1294_v59, %v1294_v59  ;;  %v689_v33 = vmul.f32 %v1344_v57, %v1344_v57 }
 0x163   : > { %v680_v7 = vmul.f32 %v1298_v62, %v1298_v62  ;;  %v690_v2 = vmul.f32 %v1348_v60, %v1348_v60 }
 0x164   : > { %v705_v17 = vadd.f32 %v704_v10, %v679_v4 }
 0x165   : > { %v589_v8 = vpop.f32.mrf.mxu2  ;;  %v726_v18 = vadd.f32 %v725_v14, %v680_v7 }
 0x166   : > { %v654_v11 = vpop.f32.mrf.mxu3  ;;  %v706_v27 = vadd.f32 %v705_v17, %v681_v21  ;;  %v1352_v0 = vadd.f32 %v589_v8, %v469_v53 }
 0x167   : > { %v727_v16 = vadd.f32 %v726_v18, %v682_v26  ;;  %v1356_v3 = vadd.f32 %v654_v11, %v469_v53 }
 0x168   : > { %v707_v39 = vadd.f32 %v706_v27, %v683_v29  ;;  %v691_v10 = vmul.f32 %v1352_v0, %v1352_v0 }
 0x169   : > { %v728_v20 = vadd.f32 %v727_v16, %v684_v19  ;;  %v484_v14 = vpop.permute.xlu0 %483  ;;  %v692_v17 = vmul.f32 %v1356_v3, %v1356_v3 }
 0x16a   : > { %v708_v50 = vadd.f32 %v707_v39, %v685_v42  ;;  %v489_v39 = vpop.permute.xlu1 %488 }
 0x16b   : > { %v729_v25 = vadd.f32 %v728_v20, %v686_v24 }
 0x16c   : > { %v709_v61 = vadd.f32 %v708_v50, %v687_v55 }
 0x16d   : > { %v592_v28 = vpop.f32.mrf.mxu2  ;;  %v730_v63 = vadd.f32 %v729_v25, %v688_v30 }
 0x16e   : > { %v657_v37 = vpop.f32.mrf.mxu3  ;;  %v710_v48 = vadd.f32 %v709_v61, %v689_v33  ;;  %v1358_v4 = vadd.f32 %v592_v28, %v474_v1 }
 0x16f   : > { %v731_v6 = vadd.f32 %v730_v63, %v690_v2  ;;  %v1360_v52 = vadd.f32 %v657_v37, %v474_v1 }
 0x170   : > { %v711_v18 = vadd.f32 %v710_v48, %v691_v10  ;;  %v693_v21 = vmul.f32 %v1358_v4, %v1358_v4 }
 0x171   : > { %v732_v26 = vadd.f32 %v731_v6, %v692_v17  ;;  %v694_v27 = vmul.f32 %v1360_v52, %v1360_v52 }
 0x172   : > { %v712_v37 = vadd.f32 %v711_v18, %v693_v21 }
 0x173   : > { %v733_v41 = vadd.f32 %v732_v26, %v694_v27 }
 0x175   : > { %v595_v54 = vpop.f32.mrf.mxu2 }
 0x176   : > { %v660_v58 = vpop.f32.mrf.mxu3  ;;  %v1364_v13 = vadd.f32 %v595_v54, %v479_v5 }
 0x177   : > { %v1368_v11 = vadd.f32 %v660_v58, %v479_v5 }
 0x178   : > { %v695_v28 = vmul.f32 %v1364_v13, %v1364_v13 }
 0x179   : > { %v696_v29 = vmul.f32 %v1368_v11, %v1368_v11 }
 0x17a   : > { %v713_v24 = vadd.f32 %v712_v37, %v695_v28 }
 0x17b   : > { %v734_v53 = vadd.f32 %v733_v41, %v696_v29 }
 0x17d   : > { %v598_v7 = vpop.f32.mrf.mxu2 }
 0x17e   : > { %v663_v8 = vpop.f32.mrf.mxu3  ;;  %v1372_v23 = vadd.f32 %v598_v7, %v484_v14 }
 0x17f   : > { %v1376_v16 = vadd.f32 %v663_v8, %v484_v14 }
 0x180   : > { %v697_v19 = vmul.f32 %v1372_v23, %v1372_v23 }
 0x181   : > { %v698_v20 = vmul.f32 %v1376_v16, %v1376_v16 }
 0x182   : > { %v714_v54 = vadd.f32 %v713_v24, %v697_v19 }
 0x183   : > { %v735_v58 = vadd.f32 %v734_v53, %v698_v20 }
 0x185   : > { %v601_v42 = vpop.f32.mrf.mxu2 }
 0x186   : > { %v1386_v49 = vadd.f32 %v601_v42, %v489_v39  ;;  %v666_v50 = vpop.f32.mrf.mxu3 }
 0x187   : > { %v1388_v25 = vadd.f32 %v666_v50, %v489_v39 }
 0x188   : > { %v699_v55 = vmul.f32 %v1386_v49, %v1386_v49 }
 0x189   : > { %v700_v30 = vmul.f32 %v1388_v25, %v1388_v25 }
 0x18a   : > { %v715_v61 = vadd.f32 %v714_v54, %v699_v55 }
 0x18b   : > { %v736_v63 = vadd.f32 %v735_v58, %v700_v30 }
 0x18c   : > { %v716_v33 = vrot.slane %v715_v61, 4 }
 0x18d   : > { %v737_v1 = vrot.slane %v736_v63, 4 }
 0x18e   : > { %v717_v2 = vadd.f32 %v716_v33, %v715_v61 }
 0x18f   : > { %v738_v48 = vadd.f32 %v737_v1, %v736_v63 }
 0x190   : > { %v718_v5 = vrot.slane %v717_v2, 2 }
 0x191   : > { %v739_v6 = vrot.slane %v738_v48, 2 }
 0x192   : > { %v719_v7 = vadd.f32 %v718_v5, %v717_v2 }
 0x193   : > { %v740_v10 = vadd.f32 %v739_v6, %v738_v48 }
 0x194   : > { %v720_v8 = vrot.slane %v719_v7, 1 }
 0x195   : > { %v741_v14 = vrot.slane %v740_v10, 1 }
 0x196   : > { %v721_v17 = vadd.f32 %v720_v8, %v719_v7 }
 0x197   : > { %v742_v18 = vadd.f32 %v741_v14, %v740_v10 }
 0x198   : > { %v743_v21 = vmax.f32 %v721_v17, 1e-24 }
 0x199   : > { %v744_v26 = vmax.f32 %v742_v18, 1e-24 }
 0x19a   : > { %1005 = vrsqrt.f32 %v743_v21  ;;  %vm751_vm2 = vweird.f32 %v743_v21 }
 0x19b   : > { %1007 = vrsqrt.f32 %v744_v26  ;;  %vm761_vm5 = vweird.f32 %v744_v26 }
 0x1a0   : > { %v1006_v27 = vpop.eup %1005 }
 0x1a1   : > { %v1008_v28 = vpop.eup %1007  ;;  %v746_v29 = vmul.f32 %v1006_v27, %v743_v21  ;;  %vm752_vm1 = vweird.f32 %v1006_v27 }
 0x1a2   : > { %v756_v19 = vmul.f32 %v1008_v28, %v744_v26  ;;  %vm753_vm3 = vmor %vm751_vm2, %vm752_vm1  ;;  %vm762_vm4 = vweird.f32 %v1008_v28 }
 0x1a3   : > { %v747_v37 = vmul.f32 %v1006_v27, %v746_v29  ;;  %vm763_vm6 = vmor %vm761_vm5, %vm762_vm4 }
 0x1a4   : > { %v757_v20 = vmul.f32 %v1008_v28, %v756_v19 }
 0x1a5   : > { %v748_v39 = vmul.f32 0.5, %v747_v37 }
 0x1a6   : > { %v758_v50 = vmul.f32 0.5, %v757_v20 }
 0x1a7   : > { %v749_v41 = vsub.f32 1.5, %v748_v39 }
 0x1a8   : > { %v759_v63 = vsub.f32 1.5, %v758_v50 }
 0x1a9   : > { %v750_v42 = vmul.f32 %v1006_v27, %v749_v41 }
 0x1ab   : > { %v754_v24 = vsel %vm753_vm3, %v1006_v27, %v750_v42 }
 0x1ac   : > { %v765_v53 = vmul.f32 %v754_v24, %v1258_v31  ;;  %v767_v54 = vmul.f32 %v754_v24, %v1260_v32  ;;  %v769_v55 = vmul.f32 %v754_v24, %v1272_v40  ;;  %v771_v58 = vmul.f32 %v754_v24, %v1280_v45 }
 0x1ad   : > { %v773_v30 = vmul.f32 %v754_v24, %v1286_v51  ;;  %v775_v61 = vmul.f32 %v754_v24, %v1294_v59  ;;  %v777_v33 = vmul.f32 %v754_v24, %v1308_v9  ;;  %v779_v31 = vmul.f32 %v754_v24, %v1315_v22 }
 0x1ae   : > { %797 = vst [vmem:[%s1398_s25] sm:$0xff] %v765_v53  ;;  %v781_v32 = vmul.f32 %v754_v24, %v1325_v36  ;;  %v783_v40 = vmul.f32 %v754_v24, %v1335_v43  ;;  %v760_v45 = vmul.f32 %v1008_v28, %v759_v63  ;;  %v785_v51 = vmul.f32 %v754_v24, %v1344_v57 }
 0x1af   : > { %799 = vst [vmem:[%s1398_s25 + $0x10] sm:$0xff] %v767_v54  ;;  %v787_v59 = vmul.f32 %v754_v24, %v1352_v0  ;;  %v789_v9 = vmul.f32 %v754_v24, %v1358_v4  ;;  %v791_v22 = vmul.f32 %v754_v24, %v1364_v13  ;;  %v793_v43 = vmul.f32 %v754_v24, %v1372_v23 }
 0x1b0   : > { %801 = vst [vmem:[%s1398_s25 + $0x20] sm:$0xff] %v769_v55  ;;  %v764_v36 = vsel %vm763_vm6, %v1008_v28, %v760_v45  ;;  %v795_v57 = vmul.f32 %v754_v24, %v1386_v49 }
 0x1b1   : > { %803 = vst [vmem:[%s1398_s25 + $0x30] sm:$0xff] %v771_v58  ;;  %v766_v0 = vmul.f32 %v764_v36, %v1264_v34  ;;  %v768_v4 = vmul.f32 %v764_v36, %v1266_v35  ;;  %v770_v13 = vmul.f32 %v764_v36, %v1278_v44  ;;  %v772_v23 = vmul.f32 %v764_v36, %v1282_v47 }
 0x1b2   : > { %805 = vst [vmem:[%s1398_s25 + $0x40] sm:$0xff] %v773_v30  ;;  %v774_v49 = vmul.f32 %v764_v36, %v1290_v56  ;;  %v776_v1 = vmul.f32 %v764_v36, %v1298_v62  ;;  %v778_v34 = vmul.f32 %v764_v36, %v1310_v12  ;;  %v780_v35 = vmul.f32 %v764_v36, %v1320_v15 }
 0x1b3   : > { %807 = vst [vmem:[%s1398_s25 + $0x50] sm:$0xff] %v775_v61  ;;  %v782_v44 = vmul.f32 %v764_v36, %v1330_v38  ;;  %v784_v47 = vmul.f32 %v764_v36, %v1340_v46  ;;  %v786_v56 = vmul.f32 %v764_v36, %v1348_v60  ;;  %v788_v62 = vmul.f32 %v764_v36, %v1356_v3 }
 0x1b4   : > { %809 = vst [vmem:[%s1398_s25 + $0x60] sm:$0xff] %v777_v33  ;;  %v790_v12 = vmul.f32 %v764_v36, %v1360_v52  ;;  %v792_v15 = vmul.f32 %v764_v36, %v1368_v11  ;;  %v794_v38 = vmul.f32 %v764_v36, %v1376_v16  ;;  %v796_v46 = vmul.f32 %v764_v36, %v1388_v25 }
 0x1b5   : > { %811 = vst [vmem:[%s1398_s25 + $0x70] sm:$0xff] %v779_v31 }
 0x1b6   : > { %813 = vst [vmem:[%s1398_s25 + $0x80] sm:$0xff] %v781_v32 }
 0x1b7   : > { %815 = vst [vmem:[%s1398_s25 + $0x90] sm:$0xff] %v783_v40 }
 0x1b8   : > { %817 = vst [vmem:[%s1398_s25 + $0xa0] sm:$0xff] %v785_v51 }
 0x1b9   : > { %819 = vst [vmem:[%s1398_s25 + $0xb0] sm:$0xff] %v787_v59 }
 0x1ba   : > { %821 = vst [vmem:[%s1398_s25 + $0xc0] sm:$0xff] %v789_v9 }
 0x1bb   : > { %823 = vst [vmem:[%s1398_s25 + $0xd0] sm:$0xff] %v791_v22 }
 0x1bc   : > { %825 = vst [vmem:[%s1398_s25 + $0xe0] sm:$0xff] %v793_v43 }
 0x1bd   : > { %827 = vst [vmem:[%s1398_s25 + $0xf0] sm:$0xff] %v795_v57 }
 0x1be   : > { %798 = vst [vmem:[%s1398_s25 + $0x8] sm:$0xff] %v766_v0 }
 0x1bf   : > { %800 = vst [vmem:[%s1398_s25 + $0x18] sm:$0xff] %v768_v4 }
 0x1c0   : > { %802 = vst [vmem:[%s1398_s25 + $0x28] sm:$0xff] %v770_v13 }
 0x1c1   : > { %804 = vst [vmem:[%s1398_s25 + $0x38] sm:$0xff] %v772_v23 }
 0x1c2   : > { %806 = vst [vmem:[%s1398_s25 + $0x48] sm:$0xff] %v774_v49 }
 0x1c3   : > { %808 = vst [vmem:[%s1398_s25 + $0x58] sm:$0xff] %v776_v1 }
 0x1c4   : > { %810 = vst [vmem:[%s1398_s25 + $0x68] sm:$0xff] %v778_v34 }
 0x1c5   : > { %812 = vst [vmem:[%s1398_s25 + $0x78] sm:$0xff] %v780_v35 }
 0x1c6   : > { %814 = vst [vmem:[%s1398_s25 + $0x88] sm:$0xff] %v782_v44 }
 0x1c7   : > { %816 = vst [vmem:[%s1398_s25 + $0x98] sm:$0xff] %v784_v47 }
 0x1c8   : > { %818 = vst [vmem:[%s1398_s25 + $0xa8] sm:$0xff] %v786_v56 }
 0x1c9   : > { %820 = vst [vmem:[%s1398_s25 + $0xb8] sm:$0xff] %v788_v62 }
 0x1ca   : > { %822 = vst [vmem:[%s1398_s25 + $0xc8] sm:$0xff] %v790_v12 }
 0x1cb   : > { %824 = vst [vmem:[%s1398_s25 + $0xd8] sm:$0xff] %v792_v15 }
 0x1cc   : > { %826 = vst [vmem:[%s1398_s25 + $0xe8] sm:$0xff] %v794_v38 }
 0x1cd   : > { %828 = vst [vmem:[%s1398_s25 + $0xf8] sm:$0xff] %v796_v46 }
 0x1ce PF: > { %s15_s20 = sadd.s32 1, %s1031_s20   ;;  %s1479_s18 = smov %s1027_s19 }
 0x1cf   : > { %p12_p5 = scmp.ge.s32.totalorder %s15_s20, 4   ;;  %s1480_s19 = smov %s1482_s21 }
 0x1d1   :  { %14 = sbr.rel (!%p12_p5) target bundleno = 2 (0x2), region = 70 }

</bundles_post_ra>
